<compile_context>
chip_gen: v6e
topology: v6e:2x2x1
jax: 0.10.0
libtpu: 0.0.40
codegen_flags: <defaults>
</compile_context>

<pallas_src>
import functools

import jax
import jax.numpy as jnp
from jax.experimental import pallas as pl
from jax.experimental.pallas import tpu as pltpu

LANE = 128
SUBLANE_BF16 = 16  # one bf16 vreg holds 16 sublanes


def _round_up(x, m):
    return ((x + m - 1) // m) * m


# ------------------------------ Pallas kernel -------------------------------

def _fused_mlp_kernel(x_ref, w_slab_ref, bias_ref, o_ref, *, layer_meta):
    """Whole 8-layer MLP for one batch tile.

    layer_meta: static tuple of (row_offset_in_slab, fin_pad, fout_pad).
    Weights/bias are VMEM-resident (constant index_map); only x/out are tiled.
    """
    n_layers = len(layer_meta)
    h = x_ref[...]  # (tb, 128) bf16, zero-padded input tile
    for i, (row0, fin_p, fout_p) in enumerate(layer_meta):
        # Static, tile-aligned slice of the resident weight slab (a view).
        w = w_slab_ref[row0:row0 + fin_p, 0:fout_p]
        # MXU: bf16 x bf16 -> f32 accumulation.
        y = jnp.dot(h.astype(w_slab_ref.dtype), w,
                    preferred_element_type=jnp.float32)
        # f32 epilogue on the VPU (BN already folded into bias/weights).
        y = y + bias_ref[i:i + 1, 0:fout_p]
        if i < n_layers - 1:
            h = jnp.maximum(y, 0.0)  # ReLU; padded columns stay exactly 0
        else:
            o_ref[...] = y.astype(o_ref.dtype)


def _fused_mlp(x_pad, w_slab, bias_slab, layer_meta, tb):
    B_pad, fin0_p = x_pad.shape
    out_pad = layer_meta[-1][2]
    grid = (B_pad // tb,)
    kernel = functools.partial(_fused_mlp_kernel, layer_meta=layer_meta)
    return pl.pallas_call(
        kernel,
        out_shape=jax.ShapeDtypeStruct((B_pad, out_pad), jnp.float32),
        grid=grid,
        in_specs=[
            # Batch-tiled input.
            pl.BlockSpec((tb, fin0_p), lambda i: (i, 0)),
            # Constant block index -> weights stay VMEM-resident across tiles.
            pl.BlockSpec(w_slab.shape, lambda i: (0, 0)),
            pl.BlockSpec(bias_slab.shape, lambda i: (0, 0)),
        ],
        out_specs=pl.BlockSpec((tb, out_pad), lambda i: (i, 0)),
        compiler_params=pltpu.CompilerParams(
            dimension_semantics=("parallel",),   # lights up v7x's 2nd TC
            vmem_limit_bytes=32 * 1024 * 1024,   # safe on v5e/v6e/v7x
        ),
    )(x_pad, w_slab, bias_slab)


# --------------------------- Parameter construction -------------------------

def init_params(context, key, weight_dtype=jnp.bfloat16):
    """Deterministic params matching the PyTorch module's shapes, with
    eval-mode BatchNorm folded into padded weights/bias, packed into slabs."""
    in_size = int(((context - 1) * 2 + 3) * 13)
    dims = [in_size,
            2 * in_size, 3 * in_size, 4 * in_size,
            3 * in_size, 2 * in_size, in_size,
            64, 40]
    padded = [_round_up(d, LANE) for d in dims]
    n_layers = len(dims) - 1
    max_out_pad = max(padded[1:])
    eps = 1e-5

    layer_meta = []
    w_rows = []
    bias_rows = []
    row0 = 0
    for i in range(n_layers):
        fin, fout = dims[i], dims[i + 1]
        fin_p, fout_p = padded[i], padded[i + 1]
        key, kw, kb, kg, kbe, km, kv = jax.random.split(key, 7)
        bound = float(fin) ** -0.5
        w = jax.random.uniform(kw, (fin, fout), jnp.float32, -bound, bound)
        b = jax.random.uniform(kb, (fout,), jnp.float32, -bound, bound)
        if i < n_layers - 1:
            # Fold eval-mode BatchNorm1d: scale = gamma/sqrt(var+eps),
            # shift = beta - mean*scale;  W' = W*scale, b' = b*scale + shift.
            gamma = jax.random.uniform(kg, (fout,), jnp.float32, 0.5, 1.5)
            beta = jax.random.uniform(kbe, (fout,), jnp.float32, -0.5, 0.5)
            r_mean = jax.random.uniform(km, (fout,), jnp.float32, -0.5, 0.5)
            r_var = jax.random.uniform(kv, (fout,), jnp.float32, 0.5, 1.5)
            scale = gamma / jnp.sqrt(r_var + eps)
            shift = beta - r_mean * scale
            w_eff = w * scale[None, :]
            b_eff = b * scale + shift
        else:
            w_eff, b_eff = w, b
        # Zero-pad to lane-aligned shapes; padded rows/cols are mathematically inert.
        w_pad = jnp.zeros((fin_p, max_out_pad), jnp.float32).at[:fin, :fout].set(w_eff)
        b_pad = jnp.zeros((max_out_pad,), jnp.float32).at[:fout].set(b_eff)
        w_rows.append(w_pad)
        bias_rows.append(b_pad)
        layer_meta.append((row0, fin_p, fout_p))
        row0 += fin_p

    # One contiguous bf16 weight slab (sum(fin_p)=1792, 384) -> single DMA.
    w_slab = jnp.concatenate(w_rows, axis=0).astype(weight_dtype)
    # One (8, 384) f32 bias slab -> single DMA.
    bias_slab = jnp.stack(bias_rows, axis=0)
    return in_size, dims, tuple(layer_meta), w_slab, bias_slab


# --------------------------------- Forward ----------------------------------

@functools.partial(jax.jit, static_argnames=("layer_meta", "out_dim", "tb"))
def network_forward(x, w_slab, bias_slab, *, layer_meta, out_dim, tb=None):
    B, f_in = x.shape
    fin0_p = layer_meta[0][1]
    if tb is None:
        # 256-multiples fill the v6e/v7x MXU; below that, 16-multiples keep
        # bf16 LHS vregs fully packed (and satisfy the (8,128) tiling rule).
        tb = 256 if B >= 256 else _round_up(max(B, SUBLANE_BF16), SUBLANE_BF16)
    B_pad = _round_up(B, tb)
    # Pad batch and feature dims; cast to bf16 (the MXU consumes bf16 anyway).
    x_pad = jnp.zeros((B_pad, fin0_p), jnp.bfloat16).at[:B, :f_in].set(
        x.astype(jnp.bfloat16))
    out_pad = _fused_mlp(x_pad, w_slab, bias_slab, layer_meta, tb)
    return out_pad[:B, :out_dim]


# ----------------------------------- Main ------------------------------------

if __name__ == "__main__":
    context = 2   # -> in_size = ((2-1)*2 + 3) * 13 = 65
    batch = 32    # multiple of 16: fully packed bf16 LHS vregs

    key = jax.random.PRNGKey(0)
    key, pkey, xkey = jax.random.split(key, 3)

    in_size, dims, layer_meta, w_slab, bias_slab = init_params(context, pkey)
    x = jax.random.normal(xkey, (batch, in_size), jnp.float32)

    out = network_forward(x, w_slab, bias_slab,
                          layer_meta=layer_meta, out_dim=dims[-1])
    out = jax.block_until_ready(out)

    assert out.shape == (batch, 40), out.shape
    assert out.dtype == jnp.float32
    print("KERNEL_OK")
</pallas_src>

<mosaic_0001>
module attributes {stable_mosaic.version = 11 : i64} {
  func.func @_fused_mlp_kernel(%arg0: i32, %arg1: memref<32x128xbf16, #tpu.memory_space<vmem>>, %arg2: memref<1792x384xbf16, #tpu.memory_space<vmem>>, %arg3: memref<8x384xf32, #tpu.memory_space<vmem>>, %arg4: memref<32x128xf32, #tpu.memory_space<vmem>>) attributes {dimension_semantics = [#tpu.dimension_semantics<parallel>], iteration_bounds = array<i64: 1>, scalar_prefetch = 0 : i64, scratch_operands = 0 : i64, tpu.core_type = #tpu.core_type<tc>, window_params = [{transform_indices = @transform_0, window_bounds = array<i64: 32, 128>}, {pipeline_mode = #tpu.pipeline_mode<synchronous>, transform_indices = @transform_1, window_bounds = array<i64: 1792, 384>}, {pipeline_mode = #tpu.pipeline_mode<synchronous>, transform_indices = @transform_2, window_bounds = array<i64: 8, 384>}, {transform_indices = @transform_3, window_bounds = array<i64: 32, 128>}]} {
    %c0 = arith.constant 0 : index
    %c0_0 = arith.constant 0 : index
    %0 = vector.load %arg1[%c0, %c0_0] : memref<32x128xbf16, #tpu.memory_space<vmem>>, vector<32x128xbf16>
    %c0_1 = arith.constant 0 : index
    %c0_2 = arith.constant 0 : index
    %1 = vector.load %arg2[%c0_1, %c0_2] : memref<1792x384xbf16, #tpu.memory_space<vmem>>, vector<128x256xbf16>
    %cst = arith.constant dense<0.000000e+00> : vector<32x256xf32>
    %2 = tpu.matmul %0, %1, %cst {dimension_numbers = #tpu.dot_dimension_numbers<[1], [0], [0], [1], [0, 0, 1, 1], [], []>} : vector<32x128xbf16>, vector<128x256xbf16>, vector<32x256xf32> -> vector<32x256xf32>
    %c0_3 = arith.constant 0 : index
    %c0_4 = arith.constant 0 : index
    %3 = vector.load %arg3[%c0_3, %c0_4] : memref<8x384xf32, #tpu.memory_space<vmem>>, vector<1x256xf32>
    %4 = vector.broadcast %3 : vector<1x256xf32> to vector<32x256xf32>
    %5 = arith.addf %2, %4 : vector<32x256xf32>
    %cst_5 = arith.constant 0.000000e+00 : f32
    %6 = vector.broadcast %cst_5 : f32 to vector<32x256xf32>
    %7 = arith.maximumf %5, %6 : vector<32x256xf32>
    %c128 = arith.constant 128 : index
    %c0_6 = arith.constant 0 : index
    %8 = vector.load %arg2[%c128, %c0_6] : memref<1792x384xbf16, #tpu.memory_space<vmem>>, vector<256x256xbf16>
    %9 = arith.truncf %7 : vector<32x256xf32> to vector<32x256xbf16>
    %cst_7 = arith.constant dense<0.000000e+00> : vector<32x256xf32>
    %10 = tpu.matmul %9, %8, %cst_7 {dimension_numbers = #tpu.dot_dimension_numbers<[1], [0], [0], [1], [0, 0, 1, 1], [], []>} : vector<32x256xbf16>, vector<256x256xbf16>, vector<32x256xf32> -> vector<32x256xf32>
    %c1 = arith.constant 1 : index
    %c0_8 = arith.constant 0 : index
    %11 = vector.load %arg3[%c1, %c0_8] : memref<8x384xf32, #tpu.memory_space<vmem>>, vector<1x256xf32>
    %12 = vector.broadcast %11 : vector<1x256xf32> to vector<32x256xf32>
    %13 = arith.addf %10, %12 : vector<32x256xf32>
    %cst_9 = arith.constant 0.000000e+00 : f32
    %14 = vector.broadcast %cst_9 : f32 to vector<32x256xf32>
    %15 = arith.maximumf %13, %14 : vector<32x256xf32>
    %c384 = arith.constant 384 : index
    %c0_10 = arith.constant 0 : index
    %16 = vector.load %arg2[%c384, %c0_10] : memref<1792x384xbf16, #tpu.memory_space<vmem>>, vector<256x384xbf16>
    %17 = arith.truncf %15 : vector<32x256xf32> to vector<32x256xbf16>
    %cst_11 = arith.constant dense<0.000000e+00> : vector<32x384xf32>
    %18 = tpu.matmul %17, %16, %cst_11 {dimension_numbers = #tpu.dot_dimension_numbers<[1], [0], [0], [1], [0, 0, 1, 1], [], []>} : vector<32x256xbf16>, vector<256x384xbf16>, vector<32x384xf32> -> vector<32x384xf32>
    %c2 = arith.constant 2 : index
    %c0_12 = arith.constant 0 : index
    %19 = vector.load %arg3[%c2, %c0_12] : memref<8x384xf32, #tpu.memory_space<vmem>>, vector<1x384xf32>
    %20 = vector.broadcast %19 : vector<1x384xf32> to vector<32x384xf32>
    %21 = arith.addf %18, %20 : vector<32x384xf32>
    %cst_13 = arith.constant 0.000000e+00 : f32
    %22 = vector.broadcast %cst_13 : f32 to vector<32x384xf32>
    %23 = arith.maximumf %21, %22 : vector<32x384xf32>
    %c640 = arith.constant 640 : index
    %c0_14 = arith.constant 0 : index
    %24 = vector.load %arg2[%c640, %c0_14] : memref<1792x384xbf16, #tpu.memory_space<vmem>>, vector<384x256xbf16>
    %25 = arith.truncf %23 : vector<32x384xf32> to vector<32x384xbf16>
    %cst_15 = arith.constant dense<0.000000e+00> : vector<32x256xf32>
    %26 = tpu.matmul %25, %24, %cst_15 {dimension_numbers = #tpu.dot_dimension_numbers<[1], [0], [0], [1], [0, 0, 1, 1], [], []>} : vector<32x384xbf16>, vector<384x256xbf16>, vector<32x256xf32> -> vector<32x256xf32>
    %c3 = arith.constant 3 : index
    %c0_16 = arith.constant 0 : index
    %27 = vector.load %arg3[%c3, %c0_16] : memref<8x384xf32, #tpu.memory_space<vmem>>, vector<1x256xf32>
    %28 = vector.broadcast %27 : vector<1x256xf32> to vector<32x256xf32>
    %29 = arith.addf %26, %28 : vector<32x256xf32>
    %cst_17 = arith.constant 0.000000e+00 : f32
    %30 = vector.broadcast %cst_17 : f32 to vector<32x256xf32>
    %31 = arith.maximumf %29, %30 : vector<32x256xf32>
    %c1024 = arith.constant 1024 : index
    %c0_18 = arith.constant 0 : index
    %32 = vector.load %arg2[%c1024, %c0_18] : memref<1792x384xbf16, #tpu.memory_space<vmem>>, vector<256x256xbf16>
    %33 = arith.truncf %31 : vector<32x256xf32> to vector<32x256xbf16>
    %cst_19 = arith.constant dense<0.000000e+00> : vector<32x256xf32>
    %34 = tpu.matmul %33, %32, %cst_19 {dimension_numbers = #tpu.dot_dimension_numbers<[1], [0], [0], [1], [0, 0, 1, 1], [], []>} : vector<32x256xbf16>, vector<256x256xbf16>, vector<32x256xf32> -> vector<32x256xf32>
    %c4 = arith.constant 4 : index
    %c0_20 = arith.constant 0 : index
    %35 = vector.load %arg3[%c4, %c0_20] : memref<8x384xf32, #tpu.memory_space<vmem>>, vector<1x256xf32>
    %36 = vector.broadcast %35 : vector<1x256xf32> to vector<32x256xf32>
    %37 = arith.addf %34, %36 : vector<32x256xf32>
    %cst_21 = arith.constant 0.000000e+00 : f32
    %38 = vector.broadcast %cst_21 : f32 to vector<32x256xf32>
    %39 = arith.maximumf %37, %38 : vector<32x256xf32>
    %c1280 = arith.constant 1280 : index
    %c0_22 = arith.constant 0 : index
    %40 = vector.load %arg2[%c1280, %c0_22] : memref<1792x384xbf16, #tpu.memory_space<vmem>>, vector<256x128xbf16>
    %41 = arith.truncf %39 : vector<32x256xf32> to vector<32x256xbf16>
    %cst_23 = arith.constant dense<0.000000e+00> : vector<32x128xf32>
    %42 = tpu.matmul %41, %40, %cst_23 {dimension_numbers = #tpu.dot_dimension_numbers<[1], [0], [0], [1], [0, 0, 1, 1], [], []>} : vector<32x256xbf16>, vector<256x128xbf16>, vector<32x128xf32> -> vector<32x128xf32>
    %c5 = arith.constant 5 : index
    %c0_24 = arith.constant 0 : index
    %43 = vector.load %arg3[%c5, %c0_24] : memref<8x384xf32, #tpu.memory_space<vmem>>, vector<1x128xf32>
    %44 = vector.broadcast %43 : vector<1x128xf32> to vector<32x128xf32>
    %45 = arith.addf %42, %44 : vector<32x128xf32>
    %cst_25 = arith.constant 0.000000e+00 : f32
    %46 = vector.broadcast %cst_25 : f32 to vector<32x128xf32>
    %47 = arith.maximumf %45, %46 : vector<32x128xf32>
    %c1536 = arith.constant 1536 : index
    %c0_26 = arith.constant 0 : index
    %48 = vector.load %arg2[%c1536, %c0_26] : memref<1792x384xbf16, #tpu.memory_space<vmem>>, vector<128x128xbf16>
    %49 = arith.truncf %47 : vector<32x128xf32> to vector<32x128xbf16>
    %cst_27 = arith.constant dense<0.000000e+00> : vector<32x128xf32>
    %50 = tpu.matmul %49, %48, %cst_27 {dimension_numbers = #tpu.dot_dimension_numbers<[1], [0], [0], [1], [0, 0, 1, 1], [], []>} : vector<32x128xbf16>, vector<128x128xbf16>, vector<32x128xf32> -> vector<32x128xf32>
    %c6 = arith.constant 6 : index
    %c0_28 = arith.constant 0 : index
    %51 = vector.load %arg3[%c6, %c0_28] : memref<8x384xf32, #tpu.memory_space<vmem>>, vector<1x128xf32>
    %52 = vector.broadcast %51 : vector<1x128xf32> to vector<32x128xf32>
    %53 = arith.addf %50, %52 : vector<32x128xf32>
    %cst_29 = arith.constant 0.000000e+00 : f32
    %54 = vector.broadcast %cst_29 : f32 to vector<32x128xf32>
    %55 = arith.maximumf %53, %54 : vector<32x128xf32>
    %c1664 = arith.constant 1664 : index
    %c0_30 = arith.constant 0 : index
    %56 = vector.load %arg2[%c1664, %c0_30] : memref<1792x384xbf16, #tpu.memory_space<vmem>>, vector<128x128xbf16>
    %57 = arith.truncf %55 : vector<32x128xf32> to vector<32x128xbf16>
    %cst_31 = arith.constant dense<0.000000e+00> : vector<32x128xf32>
    %58 = tpu.matmul %57, %56, %cst_31 {dimension_numbers = #tpu.dot_dimension_numbers<[1], [0], [0], [1], [0, 0, 1, 1], [], []>} : vector<32x128xbf16>, vector<128x128xbf16>, vector<32x128xf32> -> vector<32x128xf32>
    %c7 = arith.constant 7 : index
    %c0_32 = arith.constant 0 : index
    %59 = vector.load %arg3[%c7, %c0_32] : memref<8x384xf32, #tpu.memory_space<vmem>>, vector<1x128xf32>
    %60 = vector.broadcast %59 : vector<1x128xf32> to vector<32x128xf32>
    %61 = arith.addf %58, %60 : vector<32x128xf32>
    %c0_33 = arith.constant 0 : index
    %c0_34 = arith.constant 0 : index
    %62 = vector.load %arg4[%c0_33, %c0_34] : memref<32x128xf32, #tpu.memory_space<vmem>>, vector<32x128xf32>
    tpu.vector_store %arg4[%c0_33, %c0_34], %61 {strides = array<i32>} : memref<32x128xf32, #tpu.memory_space<vmem>>, vector<32x128xf32>,
    return
  }
  func.func @transform_0(%arg0: i32) -> (i32, i32) {
    %c0_i32 = arith.constant 0 : i32
    %c0_i32_0 = arith.constant 0 : i32
    return %arg0, %c0_i32 : i32, i32
  }
  func.func @transform_1(%arg0: i32) -> (i32, i32) {
    %c0_i32 = arith.constant 0 : i32
    %c0_i32_0 = arith.constant 0 : i32
    %c0_i32_1 = arith.constant 0 : i32
    return %c0_i32, %c0_i32_0 : i32, i32
  }
  func.func @transform_2(%arg0: i32) -> (i32, i32) {
    %c0_i32 = arith.constant 0 : i32
    %c0_i32_0 = arith.constant 0 : i32
    %c0_i32_1 = arith.constant 0 : i32
    return %c0_i32, %c0_i32_0 : i32, i32
  }
  func.func @transform_3(%arg0: i32) -> (i32, i32) {
    %c0_i32 = arith.constant 0 : i32
    %c0_i32_0 = arith.constant 0 : i32
    return %arg0, %c0_i32 : i32, i32
  }
}

</mosaic_0001>

<bundles_post_ra>
// kernel: network_forward.1
= control target key start
LH: loop header
LB: loop body
LE: loop exit
PB: predicated region body
PF: predicated region fallthrough
CT: control target
= control target key end

     0   :  { %8 = vsyncpa [#allocation3], 0  ;;  %s2844_s0 = inlined_call_operand.vmem [shape: bf16[32,128], index: 0, kind: input, shape index: {}]   ;;  %s2845_s1 = inlined_call_operand.hbm [shape: bf16[1792,384], index: 1, kind: input, shape index: {}]   ;;  %s2846_s2 = inlined_call_operand.hbm [shape: f32[8,384], index: 2, kind: input, shape index: {}]   ;;  %s2847_s3 = inlined_call_operand.hbm [shape: f32[32,128], index: 3, kind: output, shape index: {}]  }
   0x1   :  { %9 = vsyncpa [#allocation6], 0 }
   0x2   :  { %10 = vsyncpa [#allocation4], 0  ;;  %s2778_s12 = smov [#allocation2]  }
   0x3   :  { %s18_s13 = sshll.u32 %s2778_s12, 4  ;;  %s19_s13 = int_to_ptr.vmem [resolvable:$true] %s18_s13 }
   0x4   :  { %s2720_s14 = scalar_lea.vmem %s19_s13, 43008  ;;  %p2725_p1 = scmp.lt.s32.totalorder %s19_s13, %s19_s13 }
   0x5   :  { %p2721_p0 = scmp.ne.s32.totalorder %s19_s13, %s2720_s14  ;;  %p2726_p2 = scmp.lt.s32.totalorder %s2720_s14, %s2720_s14 }
   0x7   :  { %p2727_p3 = por %p2726_p2, %p2725_p1 }
   0x9   :  { %p2728_p4 = pnand %p2727_p3, %p2721_p0 }
   0xb   :  { %2731 = shalt.err (!%p2728_p4)
}
   0xc   :  { %s2779_s15 = smov 192   ;;  %s2780_s16 = smov 12  }
   0xd   :  { %24 = dma.hbm_to_vmem [thread:$0]  %s2845_s1, 43008, %s19_s13, [#allocation3], %s2779_s15, %s2779_s15, %s2780_s16  }
   0xe   :  { %s2781_s19 = smov [#allocation5]  }
   0xf   :  { %s31_s20 = sshll.u32 %s2781_s19, 4  ;;  %s32_s20 = int_to_ptr.vmem [resolvable:$true] %s31_s20 }
  0x10   :  { %s2740_s21 = scalar_lea.vmem %s32_s20, 384  ;;  %p2745_p6 = scmp.lt.s32.totalorder %s32_s20, %s32_s20 }
  0x11   :  { %p2741_p5 = scmp.ne.s32.totalorder %s32_s20, %s2740_s21  ;;  %p2746_p7 = scmp.lt.s32.totalorder %s2740_s21, %s2740_s21 }
  0x13   :  { %p2747_p8 = por %p2746_p7, %p2745_p6 }
  0x15   :  { %p2748_p9 = pnand %p2747_p8, %p2741_p5 }
  0x17   :  { %2751 = shalt.err (!%p2748_p9)
}
  0x18   :  { %34 = dma.hbm_to_vmem [thread:$0]  %s2846_s2, 384, %s32_s20, [#allocation6]  }
  0x19   :  { %2772 = dma.done.wait [#allocation3], 43008  }
  0x1a   :  { %2773 = vsyncadd [#allocation3], 4294924288 }
  0x1b   :  { %2774 = dma.done.wait [#allocation6], 384  }
  0x1c   :  { %2775 = vsyncadd [#allocation6], 4294966912  ;;  %v2782_v0 = vmov 0   ;;  %v2422_v1 = vld [vmem:[#allocation2 + $0xac] ss:$12 sps:$4 sm:$0xff]   ;;  %v2446_v27 = vld [vmem:[%s2844_s0] sm:$0xff]  }
  0x1d   :  { %198 = vmatprep.mubr.bf16.mxu0 %v2782_v0  ;;  %v2424_v2 = vld [vmem:[#allocation2 + $0xa8] ss:$12 sps:$4 sm:$0xff]   ;;  %166 = vmatprep.subr.bf16.mxu0 %v2422_v1  ;;  %v2427_v4 = vld [vmem:[#allocation2 + $0x90] ss:$12 sps:$4 sm:$0xff]   ;;  %v2430_v6 = vld [vmem:[#allocation2 + $0x78] ss:$12 sps:$4 sm:$0xff]  }
  0x1e   :  { %v2425_v3 = vld [vmem:[#allocation2 + $0x94] ss:$12 sps:$4 sm:$0xff]   ;;  %167 = vmatpush1.bf16.msra.mxu0 %v2424_v2  ;;  %v2428_v5 = vld [vmem:[#allocation2 + $0x7c] ss:$12 sps:$4 sm:$0xff]   ;;  %v2431_v7 = vld [vmem:[#allocation2 + $0x64] ss:$12 sps:$4 sm:$0xff]  }
  0x1f   :  { %168 = vmatprep.subr.bf16.mxu0 %v2425_v3  ;;  %v2433_v8 = vld [vmem:[#allocation2 + $0x60] ss:$12 sps:$4 sm:$0xff]   ;;  %v2450_v11 = vld [vmem:[#allocation2 + $0x168] ss:$12 sps:$4 sm:$0xff]   ;;  %v2453_v15 = vld [vmem:[#allocation2 + $0x150] ss:$12 sps:$4 sm:$0xff]  }
  0x20   :  { %v2434_v9 = vld [vmem:[#allocation2 + $0x4c] ss:$12 sps:$4 sm:$0xff]   ;;  %v2451_v12 = vld [vmem:[#allocation2 + $0x154] ss:$12 sps:$4 sm:$0xff]   ;;  %v2454_v16 = vld [vmem:[#allocation2 + $0x13c] ss:$12 sps:$4 sm:$0xff]  }
  0x21   :  { %v2448_v10 = vld [vmem:[#allocation2 + $0x16c] ss:$12 sps:$4 sm:$0xff]   ;;  %v2436_v13 = vld [vmem:[#allocation2 + $0x48] ss:$12 sps:$4 sm:$0xff]   ;;  %v2439_v17 = vld [vmem:[#allocation2 + $0x30] ss:$12 sps:$4 sm:$0xff]  }
  0x22   :  { %169 = vmatpush1.bf16.msra.mxu0 %v2427_v4  ;;  %436 = vmatprep.subr.bf16.mxu1 %v2448_v10  ;;  %v2437_v14 = vld [vmem:[#allocation2 + $0x34] ss:$12 sps:$4 sm:$0xff]   ;;  %v2440_v18 = vld [vmem:[#allocation2 + $0x1c] ss:$12 sps:$4 sm:$0xff]   ;;  %v2456_v19 = vld [vmem:[#allocation2 + $0x138] ss:$12 sps:$4 sm:$0xff]  }
  0x23   :  { %170 = vmatprep.subr.bf16.mxu0 %v2428_v5  ;;  %437 = vmatpush1.bf16.msra.mxu1 %v2450_v11  ;;  %v2457_v20 = vld [vmem:[#allocation2 + $0x124] ss:$12 sps:$4 sm:$0xff]   ;;  %v2459_v23 = vld [vmem:[#allocation2 + $0x120] ss:$12 sps:$4 sm:$0xff]   ;;  %v2462_v26 = vld [vmem:[#allocation2 + $0x108] ss:$12 sps:$4 sm:$0xff]  }
  0x24   :  { %438 = vmatprep.subr.bf16.mxu1 %v2451_v12  ;;  %v2442_v21 = vld [vmem:[#allocation2 + $0x18] ss:$12 sps:$4 sm:$0xff]   ;;  %v2445_v25 = vld [vmem:[#allocation2] ss:$12 sps:$4 sm:$0xff]   ;;  %v2465_v29 = vld [vmem:[#allocation2 + $0xf0] ss:$12 sps:$4 sm:$0xff]  }
  0x25   :  { %v2443_v22 = vld [vmem:[#allocation2 + $0x4] ss:$12 sps:$4 sm:$0xff]   ;;  %v2460_v24 = vld [vmem:[#allocation2 + $0x10c] ss:$12 sps:$4 sm:$0xff]   ;;  %v2463_v28 = vld [vmem:[#allocation2 + $0xf4] ss:$12 sps:$4 sm:$0xff]  }
  0x26   :  { %171 = vmatpush1.bf16.msra.mxu0 %v2430_v6  ;;  %v2466_v30 = vld [vmem:[#allocation2 + $0xdc] ss:$12 sps:$4 sm:$0xff]   ;;  %v2468_v31 = vld [vmem:[#allocation2 + $0xd8] ss:$12 sps:$4 sm:$0xff]   ;;  %v2471_v34 = vld [vmem:[#allocation2 + $0xc0] ss:$12 sps:$4 sm:$0xff]  }
  0x27   :  { %172 = vmatprep.subr.bf16.mxu0 %v2431_v7  ;;  %439 = vmatpush1.bf16.msra.mxu1 %v2453_v15  ;;  %v2469_v32 = vld [vmem:[#allocation2 + $0xc4] ss:$12 sps:$4 sm:$0xff]   ;;  %v2447_v33 = vld [vmem:[%s2844_s0 + $0x8] sm:$0xff]   ;;  %v2475_v37 = vld [vmem:[#allocation2 + $0x214] ss:$12 sps:$4 sm:$0xff]   ;;  %v64_v15 = vlaneseq  ;;  %s2783_s0 = smov [#allocation7]  }
  0x28   :  { %440 = vmatprep.subr.bf16.mxu1 %v2454_v16  ;;  %v2472_v35 = vld [vmem:[#allocation2 + $0x22c] ss:$12 sps:$4 sm:$0xff]   ;;  %v2474_v36 = vld [vmem:[#allocation2 + $0x228] ss:$12 sps:$4 sm:$0xff]   ;;  %v2477_v38 = vld [vmem:[#allocation2 + $0x210] ss:$12 sps:$4 sm:$0xff]  }
  0x29   :  { %v2478_v39 = vld [vmem:[#allocation2 + $0x1fc] ss:$12 sps:$4 sm:$0xff]   ;;  %v2480_v40 = vld [vmem:[#allocation2 + $0x1f8] ss:$12 sps:$4 sm:$0xff]   ;;  %v2483_v42 = vld [vmem:[#allocation2 + $0x1e0] ss:$12 sps:$4 sm:$0xff]  }
  0x2a   :  { %173 = vmatpush1.bf16.msra.mxu0 %v2433_v8  ;;  %v2481_v41 = vld [vmem:[#allocation2 + $0x1e4] ss:$12 sps:$4 sm:$0xff]   ;;  %v2484_v43 = vld [vmem:[#allocation2 + $0x1cc] ss:$12 sps:$4 sm:$0xff]   ;;  %v2486_v44 = vld [vmem:[#allocation2 + $0x1c8] ss:$12 sps:$4 sm:$0xff]  }
  0x2b   :  { %174 = vmatprep.subr.bf16.mxu0 %v2434_v9  ;;  %441 = vmatpush1.bf16.msra.mxu1 %v2456_v19  ;;  %v2487_v45 = vld [vmem:[#allocation2 + $0x1b4] ss:$12 sps:$4 sm:$0xff]   ;;  %v2489_v46 = vld [vmem:[#allocation2 + $0x1b0] ss:$12 sps:$4 sm:$0xff]   ;;  %v2492_v48 = vld [vmem:[#allocation2 + $0x198] ss:$12 sps:$4 sm:$0xff]  }
  0x2c   :  { %442 = vmatprep.subr.bf16.mxu1 %v2457_v20  ;;  %v2490_v47 = vld [vmem:[#allocation2 + $0x19c] ss:$12 sps:$4 sm:$0xff]   ;;  %v2493_v49 = vld [vmem:[#allocation2 + $0x184] ss:$12 sps:$4 sm:$0xff]   ;;  %v2495_v50 = vld [vmem:[#allocation2 + $0x180] ss:$12 sps:$4 sm:$0xff]  }
  0x2d   :  { %v2496_v51 = vld [vmem:[#allocation2 + $0x2e8] ss:$12 sps:$4 sm:$0xff]   ;;  %v2498_v52 = vld [vmem:[#allocation2 + $0x2ec] ss:$12 sps:$4 sm:$0xff]   ;;  %v2499_v54 = vld [vmem:[#allocation2 + $0x2d0] ss:$12 sps:$4 sm:$0xff]  }
  0x2e   :  { %175 = vmatpush1.bf16.msra.mxu0 %v2436_v13  ;;  %v2501_v53 = vld [vmem:[#allocation2 + $0x2d4] ss:$12 sps:$4 sm:$0xff]   ;;  %v2504_v55 = vld [vmem:[#allocation2 + $0x2bc] ss:$12 sps:$4 sm:$0xff]   ;;  %v2502_v57 = vld [vmem:[#allocation2 + $0x2b8] ss:$12 sps:$4 sm:$0xff]  }
  0x2f   :  { %176 = vmatprep.subr.bf16.mxu0 %v2437_v14  ;;  %443 = vmatpush1.bf16.msra.mxu1 %v2459_v23  ;;  %v2523_v56 = vld [vmem:[#allocation2 + $0x3b0] ss:$12 sps:$4 sm:$0xff]   ;;  %v2505_v59 = vld [vmem:[#allocation2 + $0x2a0] ss:$12 sps:$4 sm:$0xff]   ;;  %v2508_v61 = vld [vmem:[#allocation2 + $0x288] ss:$12 sps:$4 sm:$0xff]  }
  0x30   :  { %444 = vmatprep.subr.bf16.mxu1 %v2460_v24  ;;  %v2507_v58 = vld [vmem:[#allocation2 + $0x2a4] ss:$12 sps:$4 sm:$0xff]   ;;  %v2510_v60 = vld [vmem:[#allocation2 + $0x28c] ss:$12 sps:$4 sm:$0xff]   ;;  %v2513_v62 = vld [vmem:[#allocation2 + $0x274] ss:$12 sps:$4 sm:$0xff]  }
  0x31   :  { %v2511_v63 = vld [vmem:[#allocation2 + $0x270] ss:$12 sps:$4 sm:$0xff]   ;;  %v2514_v2 = vld [vmem:[#allocation2 + $0x258] ss:$12 sps:$4 sm:$0xff]   ;;  %v2517_v4 = vld [vmem:[#allocation2 + $0x240] ss:$12 sps:$4 sm:$0xff]  }
  0x32   :  { %177 = vmatpush1.bf16.msra.mxu0 %v2439_v17  ;;  %v2516_v1 = vld [vmem:[#allocation2 + $0x25c] ss:$12 sps:$4 sm:$0xff]   ;;  %v2519_v3 = vld [vmem:[#allocation2 + $0x244] ss:$12 sps:$4 sm:$0xff]   ;;  %v2522_v5 = vld [vmem:[#allocation2 + $0x3ac] ss:$12 sps:$4 sm:$0xff]  }
  0x33   :  { %178 = vmatprep.subr.bf16.mxu0 %v2440_v18  ;;  %445 = vmatpush1.bf16.msra.mxu1 %v2462_v26  ;;  %v2520_v6 = vld [vmem:[#allocation2 + $0x3a8] ss:$12 sps:$4 sm:$0xff]   ;;  %v2525_v8 = vld [vmem:[#allocation2 + $0x390] ss:$12 sps:$4 sm:$0xff]   ;;  %v2530_v10 = vld [vmem:[#allocation2 + $0x378] ss:$12 sps:$4 sm:$0xff]  }
  0x34   :  { %446 = vmatprep.subr.bf16.mxu1 %v2463_v28  ;;  %v2527_v7 = vld [vmem:[#allocation2 + $0x394] ss:$12 sps:$4 sm:$0xff]   ;;  %v2532_v9 = vld [vmem:[#allocation2 + $0x37c] ss:$12 sps:$4 sm:$0xff]   ;;  %v2537_v11 = vld [vmem:[#allocation2 + $0x364] ss:$12 sps:$4 sm:$0xff]  }
  0x35   :  { %v2535_v12 = vld [vmem:[#allocation2 + $0x360] ss:$12 sps:$4 sm:$0xff]   ;;  %v2540_v14 = vld [vmem:[#allocation2 + $0x348] ss:$12 sps:$4 sm:$0xff]   ;;  %v2820_v16 = vshrl.u32 %v64_v15, 7  ;;  %s2075_s26 = sshll.u32 %s2783_s0, 4  ;;  %s2076_s26 = int_to_ptr.vmem [resolvable:$true] %s2075_s26 }
  0x36   :  { %179 = vmatpush1.bf16.msra.mxu0 %v2442_v21  ;;  %v2542_v13 = vld [vmem:[#allocation2 + $0x34c] ss:$12 sps:$4 sm:$0xff]   ;;  %v62_v19 = vld [vmem:[#allocation5] ss:$8 sm:$0x3]  ;;  %s2752_s27 = scalar_lea.vmem %s2076_s26, 512  ;;  %p2757_p11 = scmp.lt.s32.totalorder %s2076_s26, %s2076_s26 }
  0x37   :  { %180 = vmatprep.subr.bf16.mxu0 %v2443_v22  ;;  %447 = vmatpush1.bf16.msra.mxu1 %v2465_v29  ;;  %v2823_v17 = vsub.s32 1, %v2820_v16  ;;  %v2826_v18 = vsub.s32 0, %v2820_v16  ;;  %p2753_p10 = scmp.ne.s32.totalorder %s2076_s26, %s2752_s27  ;;  %p2758_p12 = scmp.lt.s32.totalorder %s2752_s27, %s2752_s27 }
  0x38   :  { %448 = vmatprep.subr.bf16.mxu1 %v2466_v30 }
  0x39   :  { %v71_v21 = vrot.slane %v62_v19, %v2823_v17  ;;  %v67_v22 = vrot.slane %v62_v19, %v2826_v18  ;;  %p2759_p13 = por %p2758_p12, %p2757_p11 }
  0x3a   :  { %181 = vmatpush1.bf16.msra.mxu0 %v2445_v25 }
  0x3b   :  { %449 = vmatpush1.bf16.msra.mxu1 %v2468_v31  ;;  %839 = vmatprep.subr.bf16.mxu0 %v2498_v52  ;;  %p2760_p0 = pnand %p2759_p13, %p2753_p10 }
  0x3c   :  { %450 = vmatprep.subr.bf16.mxu1 %v2469_v32 }
  0x3d   :  { %199 = vmatmul.mubr.bf16.vlgmr.msra.gmra.mxu0 %v2446_v27 }
  0x3e   :  { %208 = vmatprep.mubr.bf16.mxu0 %v2782_v0  ;;  %840 = vmatpush1.bf16.msra.mxu0 %v2496_v51 }
  0x3f   :  { %451 = vmatpush1.bf16.msra.mxu1 %v2471_v34  ;;  %841 = vmatprep.subr.bf16.mxu0 %v2501_v53  ;;  %v2534_v53 = vld [vmem:[#allocation2 + $0x2c0] ss:$12 sps:$4 sm:$0xff]  }
  0x40   :  { %452 = vmatprep.subr.bf16.mxu1 %v2472_v35 }
  0x42   :  { %842 = vmatpush1.bf16.msra.mxu0 %v2499_v54 }
  0x43   :  { %453 = vmatpush2.bf16.msra.mxu1 %v2474_v36  ;;  %843 = vmatprep.subr.bf16.mxu0 %v2504_v55  ;;  %v2538_v55 = vld [vmem:[#allocation2 + $0x368] ss:$12 sps:$4 sm:$0xff]  }
  0x44   :  { %454 = vmatprep.subr.bf16.mxu1 %v2475_v37  ;;  %v2524_v37 = vld [vmem:[#allocation2 + $0x2f0] ss:$12 sps:$4 sm:$0xff]  }
  0x45   :  { %209 = vmatmul.mubr.bf16.gmra.mxu0 %v2447_v33 }
  0x46   :  { %844 = vmatpush1.bf16.msra.mxu0 %v2502_v57  ;;  %v2543_v57 = vld [vmem:[#allocation2 + $0x350] ss:$12 sps:$4 sm:$0xff]  }
  0x47   :  { %455 = vmatpush2.bf16.msra.mxu1 %v2477_v38  ;;  %845 = vmatprep.subr.bf16.mxu0 %v2507_v58  ;;  %v2544_v58 = vld [vmem:[#allocation2 + $0x290] ss:$12 sps:$4 sm:$0xff]  }
  0x48   :  { %456 = vmatprep.subr.bf16.mxu1 %v2478_v39 }
  0x4a   :  { %846 = vmatpush1.bf16.msra.mxu0 %v2505_v59  ;;  %v2547_v59 = vld [vmem:[#allocation2 + $0x334] ss:$12 sps:$4 sm:$0xff]  }
  0x4b   :  { %457 = vmatpush2.bf16.msra.mxu1 %v2480_v40  ;;  %847 = vmatprep.subr.bf16.mxu0 %v2510_v60  ;;  %v2528_v40 = vld [vmem:[#allocation2 + $0x398] ss:$12 sps:$4 sm:$0xff]  }
  0x4c   :  { %458 = vmatprep.subr.bf16.mxu1 %v2481_v41  ;;  %v2548_v60 = vld [vmem:[#allocation2 + $0x338] ss:$12 sps:$4 sm:$0xff]  }
  0x4e   :  { %848 = vmatpush1.bf16.msra.mxu0 %v2508_v61  ;;  %v2545_v61 = vld [vmem:[#allocation2 + $0x330] ss:$12 sps:$4 sm:$0xff]  }
  0x4f   :  { %459 = vmatpush2.bf16.msra.mxu1 %v2483_v42  ;;  %849 = vmatprep.subr.bf16.mxu0 %v2513_v62  ;;  %v2549_v62 = vld [vmem:[#allocation2 + $0x278] ss:$12 sps:$4 sm:$0xff]  }
  0x50   :  { %460 = vmatprep.subr.bf16.mxu1 %v2484_v43 }
  0x52   :  { %850 = vmatpush1.bf16.msra.mxu0 %v2511_v63  ;;  %v2552_v63 = vld [vmem:[#allocation2 + $0x31c] ss:$12 sps:$4 sm:$0xff]  }
  0x53   :  { %461 = vmatpush2.bf16.msra.mxu1 %v2486_v44  ;;  %851 = vmatprep.subr.bf16.mxu0 %v2516_v1  ;;  %v2553_v1 = vld [vmem:[#allocation2 + $0x320] ss:$12 sps:$4 sm:$0xff]  }
  0x54   :  { %462 = vmatprep.subr.bf16.mxu1 %v2487_v45 }
  0x56   :  { %852 = vmatpush1.bf16.msra.mxu0 %v2514_v2  ;;  %v2550_v2 = vld [vmem:[#allocation2 + $0x318] ss:$12 sps:$4 sm:$0xff]  }
  0x57   :  { %463 = vmatpush2.bf16.msra.mxu1 %v2489_v46  ;;  %853 = vmatprep.subr.bf16.mxu0 %v2519_v3  ;;  %v2529_v46 = vld [vmem:[#allocation2 + $0x2d8] ss:$12 sps:$4 sm:$0xff]   ;;  %v2554_v3 = vld [vmem:[#allocation2 + $0x260] ss:$12 sps:$4 sm:$0xff]  }
  0x58   :  { %464 = vmatprep.subr.bf16.mxu1 %v2490_v47 }
  0x5a   :  { %854 = vmatpush1.bf16.msra.mxu0 %v2517_v4  ;;  %v2557_v4 = vld [vmem:[#allocation2 + $0x304] ss:$12 sps:$4 sm:$0xff]  }
  0x5b   :  { %465 = vmatpush2.bf16.msra.mxu1 %v2492_v48  ;;  %855 = vmatprep.subr.bf16.mxu0 %v2522_v5  ;;  %v2533_v48 = vld [vmem:[#allocation2 + $0x380] ss:$12 sps:$4 sm:$0xff]   ;;  %v2558_v5 = vld [vmem:[#allocation2 + $0x308] ss:$12 sps:$4 sm:$0xff]  }
  0x5c   :  { %466 = vmatprep.subr.bf16.mxu1 %v2493_v49 }
  0x5e   :  { %856 = vmatpush2.bf16.msra.mxu0 %v2520_v6  ;;  %v2555_v6 = vld [vmem:[#allocation2 + $0x300] ss:$12 sps:$4 sm:$0xff]  }
  0x5f   :  { %467 = vmatpush2.bf16.msra.mxu1 %v2495_v50  ;;  %857 = vmatprep.subr.bf16.mxu0 %v2527_v7  ;;  %v2559_v7 = vld [vmem:[#allocation2 + $0x248] ss:$12 sps:$4 sm:$0xff]  }
  0x60   :  { %2298 = vmatprep.subr.bf16.mxu1 %v2523_v56  ;;  %v2539_v56 = vld [vmem:[#allocation2 + $0x2a8] ss:$12 sps:$4 sm:$0xff]  }
  0x62   :  { %858 = vmatpush2.bf16.msra.mxu0 %v2525_v8  ;;  %v2562_v8 = vld [vmem:[#allocation2 + $0x46c] ss:$12 sps:$4 sm:$0xff]  }
  0x63   :  { %859 = vmatprep.subr.bf16.mxu0 %v2532_v9  ;;  %v2589_v9 = vld [vmem:[#allocation2 + $0x5ec] ss:$12 sps:$4 sm:$0xff]  }
  0x66   :  { %860 = vmatpush2.bf16.msra.mxu0 %v2530_v10  ;;  %v264_v10 = vld [vmem:[#allocation5 + $0x1] ss:$8 sm:$0x3] }
  0x67   :  { %861 = vmatprep.subr.bf16.mxu0 %v2537_v11 }
  0x6a   :  { %862 = vmatpush2.bf16.msra.mxu0 %v2535_v12  ;;  %v273_v12 = vrot.slane %v264_v10, %v2823_v17 }
  0x6b   :  { %863 = vmatprep.subr.bf16.mxu0 %v2542_v13  ;;  %v269_v13 = vrot.slane %v264_v10, %v2826_v18  ;;  %v2596_v10 = vld [vmem:[#allocation2 + $0x4f8] ss:$12 sps:$4 sm:$0xff]  }
  0x6e   :  { %864 = vmatpush2.bf16.msra.mxu0 %v2540_v14 }
  0x6f   :  { %865 = vmatprep.subr.bf16.mxu0 %v2547_v59  ;;  %v2613_v59 = vld [vmem:[#allocation2 + $0x58c] ss:$12 sps:$4 sm:$0xff]  }
  0x72   :  { %866 = vmatpush2.bf16.msra.mxu0 %v2545_v61  ;;  %v2611_v61 = vld [vmem:[#allocation2 + $0x588] ss:$12 sps:$4 sm:$0xff]  }
  0x73   :  { %867 = vmatprep.subr.bf16.mxu0 %v2552_v63  ;;  %v2575_v63 = vld [vmem:[#allocation2 + $0x3f0] ss:$12 sps:$4 sm:$0xff]  }
  0x76   :  { %868 = vmatpush2.bf16.msra.mxu0 %v2550_v2  ;;  %v2578_v2 = vld [vmem:[#allocation2 + $0x3d8] ss:$12 sps:$4 sm:$0xff]  }
  0x77   :  { %869 = vmatprep.subr.bf16.mxu0 %v2557_v4  ;;  %v2581_v4 = vld [vmem:[#allocation2 + $0x3c0] ss:$12 sps:$4 sm:$0xff]  }
  0x7a   :  { %870 = vmatpush2.bf16.msra.mxu0 %v2555_v6  ;;  %v2584_v6 = vld [vmem:[#allocation2 + $0x528] ss:$12 sps:$4 sm:$0xff]  }
  0x7b   :  { %1260 = vmatprep.subr.bf16.mxu0 %v2562_v8  ;;  %v2590_v8 = vld [vmem:[#allocation2 + $0x510] ss:$12 sps:$4 sm:$0xff]  }
  0xfd   :  { %v200_v20 = vpop.f32.mrf.mxu0 }
  0xfe   :  { %v201_v27 = vadd.f32 %v200_v20, %v67_v22 }
  0xff   :  { %v202_v23 = vpop.f32.mrf.mxu0 }
 0x100   :  { %v203_v25 = vadd.f32 %v202_v23, %v71_v21  ;;  %v219_v34 = vmax.f32 %v201_v27, 0.0 }
 0x101   :  { %v204_v24 = vpop.f32.mrf.mxu0 }
 0x102   :  { %v205_v26 = vadd.f32 %v204_v24, %v67_v22  ;;  %v220_v32 = vmax.f32 %v203_v25, 0.0 }
 0x103   :  { %v206_v28 = vpop.f32.mrf.mxu0 }
 0x104   :  { %v207_v29 = vadd.f32 %v206_v28, %v71_v21  ;;  %v221_v30 = vmax.f32 %v205_v26, 0.0 }
 0x105   :  { %v210_v31 = vpop.f32.mrf.mxu0 }
 0x106   :  { %v222_v33 = vmax.f32 %v207_v29, 0.0  ;;  %v259_v38 = vpack.c.bf16 %v221_v30, %v219_v34  ;;  %v211_v43 = vadd.f32 %v210_v31, %v67_v22  ;;  %v2560_v31 = vld [vmem:[#allocation2 + $0x468] ss:$12 sps:$4 sm:$0xff]  }
 0x107   :  { %v212_v35 = vpop.f32.mrf.mxu0 }
 0x108   :  { %v260_v36 = vpack.c.bf16 %v222_v33, %v220_v32  ;;  %v213_v41 = vadd.f32 %v212_v35, %v71_v21  ;;  %v223_v51 = vmax.f32 %v211_v43, 0.0  ;;  %v2587_v32 = vld [vmem:[#allocation2 + $0x5e8] ss:$12 sps:$4 sm:$0xff]   ;;  %v2593_v43 = vld [vmem:[#allocation2 + $0x5d0] ss:$12 sps:$4 sm:$0xff]  }
 0x109   :  { %v214_v39 = vpop.f32.mrf.mxu0  ;;  %v2565_v35 = vld [vmem:[#allocation2 + $0x454] ss:$12 sps:$4 sm:$0xff]  }
 0x10a   :  { %v215_v42 = vadd.f32 %v214_v39, %v67_v22  ;;  %468 = vmatprep.mubr.bf16.mxu1 %v260_v36  ;;  %v224_v49 = vmax.f32 %v213_v41, 0.0  ;;  %v2595_v36 = vld [vmem:[#allocation2 + $0x5d4] ss:$12 sps:$4 sm:$0xff]  }
 0x10b   :  { %v216_v44 = vpop.f32.mrf.mxu0  ;;  %469 = vmatmul.mubr.bf16.vlgmr.msra.gmra.mxu1 %v259_v38 }
 0x10c   :  { %v217_v45 = vadd.f32 %v216_v44, %v71_v21  ;;  %2299 = vmatpush3.bf16.msra.mxu1 %v2524_v37  ;;  %v225_v47 = vmax.f32 %v215_v42, 0.0  ;;  %v2563_v42 = vld [vmem:[#allocation2 + $0x450] ss:$12 sps:$4 sm:$0xff]  }
 0x10d   :  { %2300 = vmatprep.subr.bf16.mxu1 %v2528_v40 }
 0x10e   :  { %v226_v50 = vmax.f32 %v217_v45, 0.0  ;;  %v261_v54 = vpack.c.bf16 %v225_v47, %v223_v51  ;;  %v2568_v45 = vld [vmem:[#allocation2 + $0x43c] ss:$12 sps:$4 sm:$0xff]   ;;  %v2566_v51 = vld [vmem:[#allocation2 + $0x438] ss:$12 sps:$4 sm:$0xff]  }
 0x110   :  { %v262_v52 = vpack.c.bf16 %v226_v50, %v224_v49  ;;  %2301 = vmatpush3.bf16.msra.mxu1 %v2529_v46  ;;  %v2601_v46 = vld [vmem:[#allocation2 + $0x5bc] ss:$12 sps:$4 sm:$0xff]  }
 0x111   :  { %2302 = vmatprep.subr.bf16.mxu1 %v2533_v48 }
 0x112   :  { %478 = vmatprep.mubr.bf16.mxu1 %v262_v52  ;;  %v2599_v52 = vld [vmem:[#allocation2 + $0x5b8] ss:$12 sps:$4 sm:$0xff]  }
 0x113   :  { %479 = vmatmul.mubr.bf16.gmra.mxu1 %v261_v54  ;;  %v2571_v54 = vld [vmem:[#allocation2 + $0x424] ss:$12 sps:$4 sm:$0xff]  }
 0x114   :  { %2303 = vmatpush3.bf16.msra.mxu1 %v2534_v53 }
 0x115   :  { %2304 = vmatprep.subr.bf16.mxu1 %v2538_v55  ;;  %v2607_v55 = vld [vmem:[#allocation2 + $0x5a4] ss:$12 sps:$4 sm:$0xff]  }
 0x118   :  { %2305 = vmatpush3.bf16.msra.mxu1 %v2539_v56  ;;  %v2569_v56 = vld [vmem:[#allocation2 + $0x420] ss:$12 sps:$4 sm:$0xff]  }
 0x119   :  { %2306 = vmatprep.subr.bf16.mxu1 %v2543_v57  ;;  %v2605_v57 = vld [vmem:[#allocation2 + $0x5a0] ss:$12 sps:$4 sm:$0xff]  }
 0x11c   :  { %2307 = vmatpush3.bf16.msra.mxu1 %v2544_v58  ;;  %v2574_v58 = vld [vmem:[#allocation2 + $0x40c] ss:$12 sps:$4 sm:$0xff]  }
 0x11d   :  { %2308 = vmatprep.subr.bf16.mxu1 %v2548_v60  ;;  %v2572_v60 = vld [vmem:[#allocation2 + $0x408] ss:$12 sps:$4 sm:$0xff]  }
 0x120   :  { %2309 = vmatpush3.bf16.msra.mxu1 %v2549_v62  ;;  %v2577_v62 = vld [vmem:[#allocation2 + $0x3f4] ss:$12 sps:$4 sm:$0xff]  }
 0x121   :  { %2310 = vmatprep.subr.bf16.mxu1 %v2553_v1  ;;  %v2580_v1 = vld [vmem:[#allocation2 + $0x3dc] ss:$12 sps:$4 sm:$0xff]  }
 0x124   :  { %2311 = vmatpush3.bf16.msra.mxu1 %v2554_v3  ;;  %v2583_v3 = vld [vmem:[#allocation2 + $0x3c4] ss:$12 sps:$4 sm:$0xff]  }
 0x125   :  { %2312 = vmatprep.subr.bf16.mxu1 %v2558_v5  ;;  %v2586_v5 = vld [vmem:[#allocation2 + $0x52c] ss:$12 sps:$4 sm:$0xff]  }
 0x128   :  { %2313 = vmatpush3.bf16.msra.mxu1 %v2559_v7  ;;  %v2592_v7 = vld [vmem:[#allocation2 + $0x514] ss:$12 sps:$4 sm:$0xff]  }
 0x129   :  { %1313 = vmatprep.subr.bf16.mxu1 %v2589_v9  ;;  %v2598_v9 = vld [vmem:[#allocation2 + $0x4fc] ss:$12 sps:$4 sm:$0xff]  }
 0x1cb   :  { %v470_v11 = vpop.f32.mrf.mxu1 }
 0x1cc   :  { %v471_v21 = vadd.f32 %v470_v11, %v269_v13  ;;  %v2604_v11 = vld [vmem:[#allocation2 + $0x4e4] ss:$12 sps:$4 sm:$0xff]  }
 0x1cd   :  { %v472_v14 = vpop.f32.mrf.mxu1 }
 0x1ce   :  { %v473_v19 = vadd.f32 %v472_v14, %v273_v12  ;;  %v489_v28 = vmax.f32 %v471_v21, 0.0  ;;  %v2608_v14 = vld [vmem:[#allocation2 + $0x4c8] ss:$12 sps:$4 sm:$0xff]   ;;  %v2617_v21 = vld [vmem:[#allocation2 + $0x570] ss:$12 sps:$4 sm:$0xff]  }
 0x1cf   :  { %v474_v15 = vpop.f32.mrf.mxu1 }
 0x1d0   :  { %v475_v20 = vadd.f32 %v474_v15, %v269_v13  ;;  %v490_v26 = vmax.f32 %v473_v19, 0.0  ;;  %v2616_v15 = vld [vmem:[#allocation2 + $0x4b4] ss:$12 sps:$4 sm:$0xff]   ;;  %v2614_v19 = vld [vmem:[#allocation2 + $0x4b0] ss:$12 sps:$4 sm:$0xff]  }
 0x1d1   :  { %v476_v22 = vpop.f32.mrf.mxu1 }
 0x1d2   :  { %v477_v23 = vadd.f32 %v476_v22, %v273_v12  ;;  %v491_v24 = vmax.f32 %v475_v20, 0.0  ;;  %v2619_v20 = vld [vmem:[#allocation2 + $0x574] ss:$12 sps:$4 sm:$0xff]   ;;  %v2622_v22 = vld [vmem:[#allocation2 + $0x49c] ss:$12 sps:$4 sm:$0xff]  }
 0x1d3   :  { %v480_v25 = vpop.f32.mrf.mxu1 }
 0x1d4   :  { %v492_v27 = vmax.f32 %v477_v23, 0.0  ;;  %v561_v33 = vpack.c.bf16 %v491_v24, %v489_v28  ;;  %v481_v39 = vadd.f32 %v480_v25, %v269_v13  ;;  %v2620_v23 = vld [vmem:[#allocation2 + $0x498] ss:$12 sps:$4 sm:$0xff]   ;;  %v2625_v24 = vld [vmem:[#allocation2 + $0x55c] ss:$12 sps:$4 sm:$0xff]  }
 0x1d5   :  { %v482_v29 = vpop.f32.mrf.mxu1  ;;  %v2623_v25 = vld [vmem:[#allocation2 + $0x558] ss:$12 sps:$4 sm:$0xff]  }
 0x1d6   :  { %v562_v30 = vpack.c.bf16 %v492_v27, %v490_v26  ;;  %v483_v37 = vadd.f32 %v482_v29, %v273_v12  ;;  %v493_v49 = vmax.f32 %v481_v39, 0.0  ;;  %v2628_v26 = vld [vmem:[#allocation2 + $0x484] ss:$12 sps:$4 sm:$0xff]   ;;  %v2626_v27 = vld [vmem:[#allocation2 + $0x480] ss:$12 sps:$4 sm:$0xff]  }
 0x1d7   :  { %v484_v34 = vpop.f32.mrf.mxu1  ;;  %v2631_v28 = vld [vmem:[#allocation2 + $0x544] ss:$12 sps:$4 sm:$0xff]   ;;  %v2629_v29 = vld [vmem:[#allocation2 + $0x540] ss:$12 sps:$4 sm:$0xff]  }
 0x1d8   :  { %v485_v38 = vadd.f32 %v484_v34, %v269_v13  ;;  %871 = vmatprep.mubr.bf16.mxu0 %v562_v30  ;;  %924 = vmatprep.mubr.bf16.mxu1 %v562_v30  ;;  %v494_v47 = vmax.f32 %v483_v37, 0.0  ;;  %v2610_v13 = vld [vmem:[#allocation2 + $0x4cc] ss:$12 sps:$4 sm:$0xff]  }
 0x1d9   :  { %v486_v40 = vpop.f32.mrf.mxu1  ;;  %872 = vmatmul.mubr.bf16.vlgmr.msra.gmra.mxu0 %v561_v33  ;;  %925 = vmatmul.mubr.bf16.vlgmr.msra.gmra.mxu1 %v561_v33  ;;  %v2634_v30 = vld [vmem:[#allocation2 + $0x6ac] ss:$12 sps:$4 sm:$0xff]  }
 0x1da   :  { %v487_v41 = vadd.f32 %v486_v40, %v273_v12  ;;  %1261 = vmatpush1.bf16.msra.mxu0 %v2560_v31  ;;  %1314 = vmatpush1.bf16.msra.mxu1 %v2587_v32  ;;  %v495_v44 = vmax.f32 %v485_v38, 0.0  ;;  %v2602_v12 = vld [vmem:[#allocation2 + $0x4e0] ss:$12 sps:$4 sm:$0xff]   ;;  %v578_v32 = vsub.s32 2, %v2820_v16 }
 0x1db   :  { %1262 = vmatprep.subr.bf16.mxu0 %v2565_v35  ;;  %1315 = vmatprep.subr.bf16.mxu1 %v2595_v36  ;;  %v566_v31 = vld [vmem:[#allocation5 + $0x2] ss:$8 sm:$0x7] }
 0x1dc   :  { %v496_v48 = vmax.f32 %v487_v41, 0.0  ;;  %v563_v53 = vpack.c.bf16 %v495_v44, %v493_v49  ;;  %v575_v35 = vrot.slane %v566_v31, %v2823_v17  ;;  %v571_v36 = vrot.slane %v566_v31, %v2826_v18 }
 0x1dd   :  { %v579_v39 = vrot.slane %v566_v31, %v578_v32  ;;  %v2646_v31 = vld [vmem:[#allocation2 + $0x64c] ss:$12 sps:$4 sm:$0xff]   ;;  %v2644_v32 = vld [vmem:[#allocation2 + $0x648] ss:$12 sps:$4 sm:$0xff]  }
 0x1de   :  { %v564_v50 = vpack.c.bf16 %v496_v48, %v494_v47  ;;  %1263 = vmatpush1.bf16.msra.mxu0 %v2563_v42  ;;  %1316 = vmatpush1.bf16.msra.mxu1 %v2593_v43 }
 0x1df   :  { %1264 = vmatprep.subr.bf16.mxu0 %v2568_v45  ;;  %1317 = vmatprep.subr.bf16.mxu1 %v2601_v46 }
 0x1e0   :  { %881 = vmatprep.mubr.bf16.mxu0 %v564_v50  ;;  %932 = vmatprep.mubr.bf16.mxu1 %v564_v50 }
 0x1e1   :  { %882 = vmatmul.mubr.bf16.gmra.mxu0 %v563_v53  ;;  %933 = vmatmul.mubr.bf16.gmra.mxu1 %v563_v53 }
 0x1e2   :  { %1265 = vmatpush1.bf16.msra.mxu0 %v2566_v51  ;;  %1318 = vmatpush1.bf16.msra.mxu1 %v2599_v52 }
 0x1e3   :  { %1266 = vmatprep.subr.bf16.mxu0 %v2571_v54  ;;  %1319 = vmatprep.subr.bf16.mxu1 %v2607_v55 }
 0x1e4   :  { %1345 = vmatprep.mubr.bf16.mxu1 %v2782_v0 }
 0x1e6   :  { %1267 = vmatpush1.bf16.msra.mxu0 %v2569_v56  ;;  %1320 = vmatpush1.bf16.msra.mxu1 %v2605_v57 }
 0x1e7   :  { %1268 = vmatprep.subr.bf16.mxu0 %v2574_v58  ;;  %1321 = vmatprep.subr.bf16.mxu1 %v2613_v59 }
 0x1ea   :  { %1269 = vmatpush1.bf16.msra.mxu0 %v2572_v60  ;;  %1322 = vmatpush1.bf16.msra.mxu1 %v2611_v61 }
 0x1eb   :  { %1270 = vmatprep.subr.bf16.mxu0 %v2577_v62  ;;  %1323 = vmatprep.subr.bf16.mxu1 %v2619_v20 }
 0x1ee   :  { %1271 = vmatpush1.bf16.msra.mxu0 %v2575_v63  ;;  %1324 = vmatpush1.bf16.msra.mxu1 %v2617_v21 }
 0x1ef   :  { %1272 = vmatprep.subr.bf16.mxu0 %v2580_v1  ;;  %1325 = vmatprep.subr.bf16.mxu1 %v2625_v24 }
 0x1f2   :  { %1273 = vmatpush1.bf16.msra.mxu0 %v2578_v2  ;;  %1326 = vmatpush1.bf16.msra.mxu1 %v2623_v25 }
 0x1f3   :  { %1274 = vmatprep.subr.bf16.mxu0 %v2583_v3  ;;  %1327 = vmatprep.subr.bf16.mxu1 %v2631_v28  ;;  %v2632_v3 = vld [vmem:[#allocation2 + $0x6a8] ss:$12 sps:$4 sm:$0xff]   ;;  %v2638_v28 = vld [vmem:[#allocation2 + $0x678] ss:$12 sps:$4 sm:$0xff]  }
 0x1f6   :  { %1275 = vmatpush1.bf16.msra.mxu0 %v2581_v4  ;;  %1328 = vmatpush1.bf16.msra.mxu1 %v2629_v29 }
 0x1f7   :  { %1276 = vmatprep.subr.bf16.mxu0 %v2586_v5  ;;  %1583 = vmatprep.subr.bf16.mxu1 %v2634_v30  ;;  %v2643_v30 = vld [vmem:[#allocation2 + $0x664] ss:$12 sps:$4 sm:$0xff]  }
 0x1fa   :  { %1277 = vmatpush2.bf16.msra.mxu0 %v2584_v6 }
 0x1fb   :  { %1278 = vmatprep.subr.bf16.mxu0 %v2592_v7  ;;  %v2637_v7 = vld [vmem:[#allocation2 + $0x694] ss:$12 sps:$4 sm:$0xff]  }
 0x1fe   :  { %1279 = vmatpush2.bf16.msra.mxu0 %v2590_v8 }
 0x1ff   :  { %1280 = vmatprep.subr.bf16.mxu0 %v2598_v9 }
 0x202   :  { %1281 = vmatpush2.bf16.msra.mxu0 %v2596_v10 }
 0x203   :  { %1282 = vmatprep.subr.bf16.mxu0 %v2604_v11 }
 0x206   :  { %1283 = vmatpush2.bf16.msra.mxu0 %v2602_v12 }
 0x207   :  { %1284 = vmatprep.subr.bf16.mxu0 %v2610_v13 }
 0x20a   :  { %1285 = vmatpush2.bf16.msra.mxu0 %v2608_v14 }
 0x20b   :  { %1286 = vmatprep.subr.bf16.mxu0 %v2616_v15  ;;  %v2635_v15 = vld [vmem:[#allocation2 + $0x690] ss:$12 sps:$4 sm:$0xff]  }
 0x20e   :  { %1287 = vmatpush2.bf16.msra.mxu0 %v2614_v19 }
 0x20f   :  { %1288 = vmatprep.subr.bf16.mxu0 %v2622_v22  ;;  %v2640_v22 = vld [vmem:[#allocation2 + $0x67c] ss:$12 sps:$4 sm:$0xff]  }
 0x212   :  { %1289 = vmatpush2.bf16.msra.mxu0 %v2620_v23 }
 0x213   :  { %1290 = vmatprep.subr.bf16.mxu0 %v2628_v26 }
 0x216   :  { %1291 = vmatpush2.bf16.msra.mxu0 %v2626_v27 }
 0x299   :  { %v873_v33 = vpop.f32.mrf.mxu0  ;;  %v2314_v34 = vpop.f32.mrf.mxu1 }
 0x29a   :  { %v874_v45 = vadd.f32 %v873_v33, %v571_v36  ;;  %v2649_v33 = vld [vmem:[#allocation2 + $0x634] ss:$12 sps:$4 sm:$0xff]  }
 0x29b   :  { %v875_v37 = vpop.f32.mrf.mxu0  ;;  %v2315_v38 = vpop.f32.mrf.mxu1 }
 0x29c   :  { %v2316_v40 = vadd.f32 %v2315_v38, %v2314_v34  ;;  %v876_v43 = vadd.f32 %v875_v37, %v575_v35  ;;  %v941_v56 = vmax.f32 %v874_v45, 0.0  ;;  %v2647_v34 = vld [vmem:[#allocation2 + $0x630] ss:$12 sps:$4 sm:$0xff]   ;;  %v2653_v38 = vld [vmem:[#allocation2 + $0x600] ss:$12 sps:$4 sm:$0xff]  }
 0x29d   :  { %v877_v41 = vpop.f32.mrf.mxu0  ;;  %v2317_v42 = vpop.f32.mrf.mxu1  ;;  %v2655_v37 = vld [vmem:[#allocation2 + $0x604] ss:$12 sps:$4 sm:$0xff]  }
 0x29e   :  { %v878_v44 = vadd.f32 %v877_v41, %v571_v36  ;;  %v927_v48 = vadd.f32 %v2316_v40, %v579_v39  ;;  %v942_v53 = vmax.f32 %v876_v43, 0.0  ;;  %v2656_v40 = vld [vmem:[#allocation2 + $0x768] ss:$12 sps:$4 sm:$0xff]   ;;  %v2667_v45 = vld [vmem:[#allocation2 + $0x724] ss:$12 sps:$4 sm:$0xff]  }
 0x29f   :  { %v879_v46 = vpop.f32.mrf.mxu0  ;;  %v2318_v47 = vpop.f32.mrf.mxu1  ;;  %v2661_v41 = vld [vmem:[#allocation2 + $0x754] ss:$12 sps:$4 sm:$0xff]   ;;  %v2664_v43 = vld [vmem:[#allocation2 + $0x73c] ss:$12 sps:$4 sm:$0xff]  }
 0x2a0   :  { %v880_v49 = vadd.f32 %v879_v46, %v575_v35  ;;  %v2319_v16 = vadd.f32 %v2318_v47, %v2317_v42  ;;  %v944_v50 = vmax.f32 %v878_v44, 0.0  ;;  %v943_v59 = vmax.f32 %v927_v48, 0.0  ;;  %v2659_v42 = vld [vmem:[#allocation2 + $0x750] ss:$12 sps:$4 sm:$0xff]   ;;  %v2662_v44 = vld [vmem:[#allocation2 + $0x738] ss:$12 sps:$4 sm:$0xff]  }
 0x2a1   :  { %v883_v51 = vpop.f32.mrf.mxu0  ;;  %v2320_v52 = vpop.f32.mrf.mxu1  ;;  %v2665_v46 = vld [vmem:[#allocation2 + $0x720] ss:$12 sps:$4 sm:$0xff]   ;;  %v2668_v48 = vld [vmem:[#allocation2 + $0x708] ss:$12 sps:$4 sm:$0xff]  }
 0x2a2   :  { %v945_v54 = vmax.f32 %v880_v49, 0.0  ;;  %v930_v55 = vadd.f32 %v2319_v16, %v579_v39  ;;  %v1001_v62 = vpack.c.bf16 %v944_v50, %v941_v56  ;;  %v884_v8 = vadd.f32 %v883_v51, %v571_v36  ;;  %v2670_v47 = vld [vmem:[#allocation2 + $0x70c] ss:$12 sps:$4 sm:$0xff]   ;;  %v2673_v49 = vld [vmem:[#allocation2 + $0x6f4] ss:$12 sps:$4 sm:$0xff]  }
 0x2a3   :  { %v885_v57 = vpop.f32.mrf.mxu0  ;;  %v2321_v58 = vpop.f32.mrf.mxu1  ;;  %v2671_v16 = vld [vmem:[#allocation2 + $0x6f0] ss:$12 sps:$4 sm:$0xff]   ;;  %v2674_v51 = vld [vmem:[#allocation2 + $0x6d8] ss:$12 sps:$4 sm:$0xff]  }
 0x2a4   :  { %v1002_v60 = vpack.c.bf16 %v945_v54, %v942_v53  ;;  %v946_v61 = vmax.f32 %v930_v55, 0.0  ;;  %v2322_v63 = vadd.f32 %v2321_v58, %v2320_v52  ;;  %v886_v5 = vadd.f32 %v885_v57, %v575_v35  ;;  %v2676_v50 = vld [vmem:[#allocation2 + $0x6dc] ss:$12 sps:$4 sm:$0xff]   ;;  %v2679_v52 = vld [vmem:[#allocation2 + $0x6c4] ss:$12 sps:$4 sm:$0xff]  }
 0x2a5   :  { %v887_v1 = vpop.f32.mrf.mxu0  ;;  %v2323_v2 = vpop.f32.mrf.mxu1  ;;  %v947_v23 = vmax.f32 %v884_v8, 0.0  ;;  %v2677_v53 = vld [vmem:[#allocation2 + $0x6c0] ss:$12 sps:$4 sm:$0xff]   ;;  %v2680_v54 = vld [vmem:[#allocation2 + $0x8e8] ss:$12 sps:$4 sm:$0xff]  }
 0x2a6   :  { %v1003_v4 = vpack.c.bf16 %v946_v61, %v943_v59  ;;  %v888_v6 = vadd.f32 %v887_v1, %v571_v36  ;;  %1292 = vmatprep.mubr.bf16.mxu0 %v1002_v60  ;;  %v935_v11 = vadd.f32 %v2322_v63, %v579_v39  ;;  %v948_v19 = vmax.f32 %v886_v5, 0.0  ;;  %v2650_v36 = vld [vmem:[#allocation2 + $0x618] ss:$12 sps:$4 sm:$0xff]   ;;  %v2681_v55 = vld [vmem:[#allocation2 + $0x828] ss:$12 sps:$4 sm:$0xff]   ;;  %2326 = vmatprep.subr.bf16.mxu0 %v2680_v54 }
 0x2a7   :  { %v889_v9 = vpop.f32.mrf.mxu0  ;;  %v2324_v10 = vpop.f32.mrf.mxu1  ;;  %1293 = vmatmul.mubr.bf16.vlgmr.msra.gmra.mxu0 %v1001_v62  ;;  %v2682_v56 = vld [vmem:[#allocation2 + $0x8d0] ss:$12 sps:$4 sm:$0xff]   ;;  %v2684_v58 = vld [vmem:[#allocation2 + $0x8b8] ss:$12 sps:$4 sm:$0xff]   ;;  %v2686_v60 = vld [vmem:[#allocation2 + $0x8a0] ss:$12 sps:$4 sm:$0xff]  }
 0x2a8   :  { %v890_v12 = vadd.f32 %v889_v9, %v575_v35  ;;  %v2325_v13 = vadd.f32 %v2324_v10, %v2323_v2  ;;  %1346 = vmatmul.mubr.bf16.vlgmr.msra.gmra.mxu1 %v1003_v4  ;;  %v950_v14 = vmax.f32 %v888_v6, 0.0  ;;  %v949_v24 = vmax.f32 %v935_v11, 0.0  ;;  %v2652_v35 = vld [vmem:[#allocation2 + $0x61c] ss:$12 sps:$4 sm:$0xff]   ;;  %2327 = vmatpush3.bf16.msra.mxu0 %v2681_v55  ;;  %v2685_v59 = vld [vmem:[#allocation2 + $0x7f8] ss:$12 sps:$4 sm:$0xff]  }
 0x2a9   :  { %1355 = vmatprep.mubr.bf16.mxu1 %v2782_v0  ;;  %1584 = vmatpush1.bf16.msra.mxu1 %v2632_v3  ;;  %v2641_v0 = vld [vmem:[#allocation2 + $0x660] ss:$12 sps:$4 sm:$0xff]   ;;  %v2683_v57 = vld [vmem:[#allocation2 + $0x810] ss:$12 sps:$4 sm:$0xff]   ;;  %v2688_v62 = vld [vmem:[#allocation2 + $0x888] ss:$12 sps:$4 sm:$0xff]  }
 0x2aa   :  { %v951_v20 = vmax.f32 %v890_v12, 0.0  ;;  %v938_v21 = vadd.f32 %v2325_v13, %v579_v39  ;;  %1585 = vmatprep.subr.bf16.mxu1 %v2637_v7  ;;  %v1004_v27 = vpack.c.bf16 %v950_v14, %v947_v23  ;;  %v2658_v39 = vld [vmem:[#allocation2 + $0x76c] ss:$12 sps:$4 sm:$0xff]   ;;  %2328 = vmatprep.subr.bf16.mxu0 %v2682_v56  ;;  %v2689_v63 = vld [vmem:[#allocation2 + $0x7c8] ss:$12 sps:$4 sm:$0xff]  }
 0x2ab   :  { %v2687_v61 = vld [vmem:[#allocation2 + $0x7e0] ss:$12 sps:$4 sm:$0xff]   ;;  %v2696_v55 = vld [vmem:[#allocation2 + $0x9a8] ss:$12 sps:$4 sm:$0xff]  }
 0x2ac   :  { %v1005_v25 = vpack.c.bf16 %v951_v20, %v948_v19  ;;  %v952_v26 = vmax.f32 %v938_v21, 0.0  ;;  %2329 = vmatpush3.bf16.msra.mxu0 %v2683_v57  ;;  %v1008_v1 = vld [vmem:[#allocation5 + $0x3] ss:$8 sm:$0x3] }
 0x2ad   :  { %1586 = vmatpush1.bf16.msra.mxu1 %v2635_v15  ;;  %2330 = vmatprep.subr.bf16.mxu0 %v2684_v58  ;;  %v1017_v2 = vrot.slane %v1008_v1, %v2823_v17  ;;  %v1013_v3 = vrot.slane %v1008_v1, %v2826_v18  ;;  %v2695_v54 = vld [vmem:[#allocation2 + $0x780] ss:$12 sps:$4 sm:$0xff]  }
 0x2ae   :  { %1302 = vmatprep.mubr.bf16.mxu0 %v1005_v25  ;;  %v1006_v29 = vpack.c.bf16 %v952_v26, %v949_v24  ;;  %1587 = vmatprep.subr.bf16.mxu1 %v2640_v22  ;;  %v1411_v56 = vld [vmem:[#allocation5 + $0x4] ss:$8 sm:$0x3] }
 0x2af   :  { %1303 = vmatmul.mubr.bf16.gmra.mxu0 %v1004_v27  ;;  %v1420_v58 = vrot.slane %v1411_v56, %v2823_v17 }
 0x2b0   :  { %1356 = vmatmul.mubr.bf16.gmra.mxu1 %v1006_v29  ;;  %2331 = vmatpush3.bf16.msra.mxu0 %v2685_v59  ;;  %v1416_v59 = vrot.slane %v1411_v56, %v2826_v18 }
 0x2b1   :  { %1588 = vmatpush1.bf16.msra.mxu1 %v2638_v28  ;;  %2332 = vmatprep.subr.bf16.mxu0 %v2686_v60 }
 0x2b2   :  { %1589 = vmatprep.subr.bf16.mxu1 %v2643_v30 }
 0x2b4   :  { %2333 = vmatpush3.bf16.msra.mxu0 %v2687_v61 }
 0x2b5   :  { %1590 = vmatpush1.bf16.msra.mxu1 %v2641_v0  ;;  %2334 = vmatprep.subr.bf16.mxu0 %v2688_v62 }
 0x2b6   :  { %1591 = vmatprep.subr.bf16.mxu1 %v2646_v31 }
 0x2b8   :  { %2335 = vmatpush3.bf16.msra.mxu0 %v2689_v63 }
 0x2b9   :  { %1592 = vmatpush1.bf16.msra.mxu1 %v2644_v32 }
 0x2ba   :  { %1593 = vmatprep.subr.bf16.mxu1 %v2649_v33 }
 0x2bd   :  { %1594 = vmatpush1.bf16.msra.mxu1 %v2647_v34 }
 0x2be   :  { %1595 = vmatprep.subr.bf16.mxu1 %v2652_v35 }
 0x2c1   :  { %1596 = vmatpush1.bf16.msra.mxu1 %v2650_v36 }
 0x2c2   :  { %1597 = vmatprep.subr.bf16.mxu1 %v2655_v37 }
 0x2c5   :  { %1598 = vmatpush1.bf16.msra.mxu1 %v2653_v38 }
 0x2c6   :  { %1599 = vmatprep.subr.bf16.mxu1 %v2658_v39 }
 0x2c9   :  { %1600 = vmatpush2.bf16.msra.mxu1 %v2656_v40 }
 0x2ca   :  { %1601 = vmatprep.subr.bf16.mxu1 %v2661_v41 }
 0x2cd   :  { %1602 = vmatpush2.bf16.msra.mxu1 %v2659_v42 }
 0x2ce   :  { %1603 = vmatprep.subr.bf16.mxu1 %v2664_v43 }
 0x2d1   :  { %1604 = vmatpush2.bf16.msra.mxu1 %v2662_v44 }
 0x2d2   :  { %1605 = vmatprep.subr.bf16.mxu1 %v2667_v45 }
 0x2d5   :  { %1606 = vmatpush2.bf16.msra.mxu1 %v2665_v46 }
 0x2d6   :  { %1607 = vmatprep.subr.bf16.mxu1 %v2670_v47 }
 0x2d9   :  { %1608 = vmatpush2.bf16.msra.mxu1 %v2668_v48 }
 0x2da   :  { %1609 = vmatprep.subr.bf16.mxu1 %v2673_v49 }
 0x2dd   :  { %1610 = vmatpush2.bf16.msra.mxu1 %v2671_v16  ;;  %v2690_v16 = vld [vmem:[#allocation2 + $0x870] ss:$12 sps:$4 sm:$0xff]  }
 0x2de   :  { %1611 = vmatprep.subr.bf16.mxu1 %v2676_v50  ;;  %v2691_v50 = vld [vmem:[#allocation2 + $0x7b0] ss:$12 sps:$4 sm:$0xff]   ;;  %2336 = vmatprep.subr.bf16.mxu0 %v2690_v16 }
 0x2df   :  { %2337 = vmatpush3.bf16.msra.mxu0 %v2691_v50 }
 0x2e1   :  { %1612 = vmatpush2.bf16.msra.mxu1 %v2674_v51  ;;  %v2692_v51 = vld [vmem:[#allocation2 + $0x858] ss:$12 sps:$4 sm:$0xff]  }
 0x2e2   :  { %1613 = vmatprep.subr.bf16.mxu1 %v2679_v52  ;;  %v2693_v52 = vld [vmem:[#allocation2 + $0x798] ss:$12 sps:$4 sm:$0xff]   ;;  %2338 = vmatprep.subr.bf16.mxu0 %v2692_v51 }
 0x2e3   :  { %2339 = vmatpush3.bf16.msra.mxu0 %v2693_v52 }
 0x2e5   :  { %1614 = vmatpush2.bf16.msra.mxu1 %v2677_v53  ;;  %v2694_v53 = vld [vmem:[#allocation2 + $0x840] ss:$12 sps:$4 sm:$0xff]  }
 0x2e6   :  { %2340 = vmatprep.subr.bf16.mxu0 %v2694_v53 }
 0x2e7   :  { %2341 = vmatpush3.bf16.msra.mxu0 %v2695_v54 }
 0x2e8   :  { %2374 = vmatprep.subr.bf16.mxu0 %v2696_v55 }
 0x367   :  { %v1294_v4 = vpop.f32.mrf.mxu0 }
 0x368   :  { %v1347_v5 = vpop.f32.mrf.mxu1  ;;  %v1295_v9 = vadd.f32 %v1294_v4, %v1013_v3 }
 0x369   :  { %v1296_v6 = vpop.f32.mrf.mxu0 }
 0x36a   :  { %v1297_v7 = vadd.f32 %v1296_v6, %v1017_v2  ;;  %v1349_v8 = vpop.f32.mrf.mxu1  ;;  %v1348_v21 = vadd.f32 %v1347_v5, %v1295_v9 }
 0x36b   :  { %v1298_v10 = vpop.f32.mrf.mxu0 }
 0x36c   :  { %v1299_v11 = vadd.f32 %v1298_v10, %v1013_v3  ;;  %v1351_v12 = vpop.f32.mrf.mxu1  ;;  %v1350_v14 = vadd.f32 %v1349_v8, %v1297_v7  ;;  %v1366_v0 = vmax.f32 %v1348_v21, 0.0  ;;  %v2698_v21 = vld [vmem:[#allocation2 + $0x978] ss:$12 sps:$4 sm:$0xff]  }
 0x36d   :  { %v1300_v13 = vpop.f32.mrf.mxu0 }
 0x36e   :  { %v1352_v15 = vadd.f32 %v1351_v12, %v1299_v11  ;;  %v1301_v19 = vadd.f32 %v1300_v13, %v1017_v2  ;;  %v1353_v20 = vpop.f32.mrf.mxu1  ;;  %v1367_v27 = vmax.f32 %v1350_v14, 0.0  ;;  %v2697_v13 = vld [vmem:[#allocation2 + $0x990] ss:$12 sps:$4 sm:$0xff]  }
 0x36f   :  { %v1304_v22 = vpop.f32.mrf.mxu0 }
 0x370   :  { %v1354_v23 = vadd.f32 %v1353_v20, %v1301_v19  ;;  %v1357_v24 = vpop.f32.mrf.mxu1  ;;  %v1368_v25 = vmax.f32 %v1352_v15, 0.0  ;;  %v1305_v31 = vadd.f32 %v1304_v22, %v1013_v3 }
 0x371   :  { %v1306_v26 = vpop.f32.mrf.mxu0 }
 0x372   :  { %v1369_v28 = vmax.f32 %v1354_v23, 0.0  ;;  %v1307_v29 = vadd.f32 %v1306_v26, %v1017_v2  ;;  %v1359_v30 = vpop.f32.mrf.mxu1  ;;  %v1406_v36 = vpack.c.bf16 %v1368_v25, %v1366_v0  ;;  %v1358_v42 = vadd.f32 %v1357_v24, %v1305_v31  ;;  %v2703_v0 = vld [vmem:[#allocation2 + $0x900] ss:$12 sps:$4 sm:$0xff]   ;;  %v2704_v31 = vld [vmem:[#allocation2 + $0xa68] ss:$12 sps:$4 sm:$0xff]  }
 0x373   :  { %v1308_v32 = vpop.f32.mrf.mxu0  ;;  %2394 = vmatprep.subr.bf16.mxu1 %v2704_v31 }
 0x374   :  { %v1407_v33 = vpack.c.bf16 %v1369_v28, %v1367_v27  ;;  %v1309_v34 = vadd.f32 %v1308_v32, %v1013_v3  ;;  %v1361_v35 = vpop.f32.mrf.mxu1  ;;  %v1360_v38 = vadd.f32 %v1359_v30, %v1307_v29  ;;  %v1370_v47 = vmax.f32 %v1358_v42, 0.0  ;;  %v2699_v27 = vld [vmem:[#allocation2 + $0x960] ss:$12 sps:$4 sm:$0xff]   ;;  %v2700_v28 = vld [vmem:[#allocation2 + $0x948] ss:$12 sps:$4 sm:$0xff]  }
 0x375   :  { %v1310_v37 = vpop.f32.mrf.mxu0  ;;  %v2701_v29 = vld [vmem:[#allocation2 + $0x930] ss:$12 sps:$4 sm:$0xff]   ;;  %v2702_v30 = vld [vmem:[#allocation2 + $0x918] ss:$12 sps:$4 sm:$0xff]  }
 0x376   :  { %v1362_v39 = vadd.f32 %v1361_v35, %v1309_v34  ;;  %v1311_v40 = vadd.f32 %v1310_v37, %v1017_v2  ;;  %v1363_v41 = vpop.f32.mrf.mxu1  ;;  %1615 = vmatprep.mubr.bf16.mxu1 %v1407_v33  ;;  %v1371_v45 = vmax.f32 %v1360_v38, 0.0  ;;  %v2705_v32 = vld [vmem:[#allocation2 + $0xa50] ss:$12 sps:$4 sm:$0xff]   ;;  %v2706_v33 = vld [vmem:[#allocation2 + $0xa38] ss:$12 sps:$4 sm:$0xff]  }
 0x377   :  { %1616 = vmatmul.mubr.bf16.vlgmr.msra.gmra.mxu1 %v1406_v36  ;;  %v2707_v34 = vld [vmem:[#allocation2 + $0xa20] ss:$12 sps:$4 sm:$0xff]   ;;  %v2708_v35 = vld [vmem:[#allocation2 + $0xa08] ss:$12 sps:$4 sm:$0xff]  }
 0x378   :  { %v1364_v43 = vadd.f32 %v1363_v41, %v1311_v40  ;;  %v1372_v44 = vmax.f32 %v1362_v39, 0.0  ;;  %2395 = vmatpush3.bf16.msra.mxu1 %v2704_v31  ;;  %v1680_v39 = vld [vmem:[#allocation5 + $0x5] ss:$0 sm:$0xff] }
 0x379   :  { %2396 = vmatprep.subr.bf16.mxu1 %v2705_v32 }
 0x37a   :  { %v1373_v46 = vmax.f32 %v1364_v43, 0.0  ;;  %v1408_v49 = vpack.c.bf16 %v1372_v44, %v1370_v47 }
 0x37c   :  { %v1409_v48 = vpack.c.bf16 %v1373_v46, %v1371_v45  ;;  %2397 = vmatpush3.bf16.msra.mxu1 %v2705_v32 }
 0x37d   :  { %2398 = vmatprep.subr.bf16.mxu1 %v2706_v33 }
 0x37e   :  { %1625 = vmatprep.mubr.bf16.mxu1 %v1409_v48 }
 0x37f   :  { %1626 = vmatmul.mubr.bf16.gmra.mxu1 %v1408_v49 }
 0x380   :  { %2399 = vmatpush3.bf16.msra.mxu1 %v2706_v33 }
 0x381   :  { %2400 = vmatprep.subr.bf16.mxu1 %v2707_v34 }
 0x384   :  { %2401 = vmatpush3.bf16.msra.mxu1 %v2707_v34 }
 0x385   :  { %2402 = vmatprep.subr.bf16.mxu1 %v2708_v35 }
 0x388   :  { %2403 = vmatpush3.bf16.msra.mxu1 %v2708_v35 }
 0x437   :  { %v1617_v57 = vpop.f32.mrf.mxu1 }
 0x438   :  { %v1618_v1 = vadd.f32 %v1617_v57, %v1416_v59 }
 0x439   :  { %v1619_v60 = vpop.f32.mrf.mxu1 }
 0x43a   :  { %v1620_v62 = vadd.f32 %v1619_v60, %v1420_v58  ;;  %v1636_v8 = vmax.f32 %v1618_v1, 0.0  ;;  %v2711_v60 = vld [vmem:[#allocation2 + $0x9c0] ss:$12 sps:$4 sm:$0xff]  }
 0x43b   :  { %v1621_v61 = vpop.f32.mrf.mxu1 }
 0x43c   :  { %v1622_v63 = vadd.f32 %v1621_v61, %v1416_v59  ;;  %v1637_v6 = vmax.f32 %v1620_v62, 0.0 }
 0x43d   :  { %v1623_v2 = vpop.f32.mrf.mxu1 }
 0x43e   :  { %v1624_v3 = vadd.f32 %v1623_v2, %v1420_v58  ;;  %v1638_v4 = vmax.f32 %v1622_v63, 0.0  ;;  %v1848_v63 = vld [vmem:[#allocation5 + $0x6] ss:$0 sm:$0xff] }
 0x43f   :  { %v1627_v5 = vpop.f32.mrf.mxu1 }
 0x440   :  { %v1639_v7 = vmax.f32 %v1624_v3, 0.0  ;;  %v1676_v11 = vpack.c.bf16 %v1638_v4, %v1636_v8  ;;  %v1628_v18 = vadd.f32 %v1627_v5, %v1416_v59 }
 0x441   :  { %v1629_v9 = vpop.f32.mrf.mxu1 }
 0x442   :  { %v1677_v10 = vpack.c.bf16 %v1639_v7, %v1637_v6  ;;  %v1630_v17 = vadd.f32 %v1629_v9, %v1420_v58  ;;  %v1640_v24 = vmax.f32 %v1628_v18, 0.0 }
 0x443   :  { %v1631_v12 = vpop.f32.mrf.mxu1 }
 0x444   :  { %v1632_v14 = vadd.f32 %v1631_v12, %v1416_v59  ;;  %1809 = vmatprep.mubr.bf16.mxu0 %v1677_v10  ;;  %v1641_v22 = vmax.f32 %v1630_v17, 0.0  ;;  %v2710_v59 = vld [vmem:[#allocation2 + $0x9d8] ss:$12 sps:$4 sm:$0xff]  }
 0x445   :  { %v1633_v15 = vpop.f32.mrf.mxu1  ;;  %1810 = vmatmul.mubr.bf16.vlgmr.msra.gmra.mxu0 %v1676_v11 }
 0x446   :  { %v1634_v19 = vadd.f32 %v1633_v15, %v1420_v58  ;;  %2375 = vmatpush3.bf16.msra.mxu0 %v2696_v55  ;;  %v1642_v20 = vmax.f32 %v1632_v14, 0.0  ;;  %v2709_v58 = vld [vmem:[#allocation2 + $0x9f0] ss:$12 sps:$4 sm:$0xff]  }
 0x447   :  { %2376 = vmatprep.subr.bf16.mxu0 %v2697_v13  ;;  %2404 = vmatprep.subr.bf16.mxu1 %v2709_v58 }
 0x448   :  { %v1643_v23 = vmax.f32 %v1634_v19, 0.0  ;;  %v1678_v26 = vpack.c.bf16 %v1642_v20, %v1640_v24  ;;  %2405 = vmatpush3.bf16.msra.mxu1 %v2709_v58 }
 0x449   :  { %2406 = vmatprep.subr.bf16.mxu1 %v2710_v59 }
 0x44a   :  { %v1679_v25 = vpack.c.bf16 %v1643_v23, %v1641_v22  ;;  %2377 = vmatpush3.bf16.msra.mxu0 %v2697_v13  ;;  %v1968_v13 = vld [vmem:[#allocation5 + $0x7] ss:$0 sm:$0xff] }
 0x44b   :  { %2378 = vmatprep.subr.bf16.mxu0 %v2698_v21 }
 0x44c   :  { %1817 = vmatprep.mubr.bf16.mxu0 %v1679_v25  ;;  %2407 = vmatpush3.bf16.msra.mxu1 %v2710_v59 }
 0x44d   :  { %1818 = vmatmul.mubr.bf16.gmra.mxu0 %v1678_v26  ;;  %2408 = vmatprep.subr.bf16.mxu1 %v2711_v60 }
 0x44e   :  { %2379 = vmatpush3.bf16.msra.mxu0 %v2698_v21 }
 0x44f   :  { %2380 = vmatprep.subr.bf16.mxu0 %v2699_v27 }
 0x450   :  { %2409 = vmatpush3.bf16.msra.mxu1 %v2711_v60 }
 0x452   :  { %2381 = vmatpush3.bf16.msra.mxu0 %v2699_v27 }
 0x453   :  { %2382 = vmatprep.subr.bf16.mxu0 %v2700_v28 }
 0x456   :  { %2383 = vmatpush3.bf16.msra.mxu0 %v2700_v28 }
 0x457   :  { %2384 = vmatprep.subr.bf16.mxu0 %v2701_v29 }
 0x45a   :  { %2385 = vmatpush3.bf16.msra.mxu0 %v2701_v29 }
 0x45b   :  { %2386 = vmatprep.subr.bf16.mxu0 %v2702_v30 }
 0x45e   :  { %2387 = vmatpush3.bf16.msra.mxu0 %v2702_v30 }
 0x45f   :  { %2388 = vmatprep.subr.bf16.mxu0 %v2703_v0 }
 0x462   :  { %2389 = vmatpush3.bf16.msra.mxu0 %v2703_v0 }
 0x505   :  { %v2342_v36 = vpop.f32.mrf.mxu0 }
 0x507   :  { %v2343_v37 = vpop.f32.mrf.mxu0 }
 0x508   :  { %v2344_v38 = vadd.f32 %v2343_v37, %v2342_v36 }
 0x509   :  { %v2345_v40 = vpop.f32.mrf.mxu0 }
 0x50a   :  { %v1812_v42 = vadd.f32 %v2344_v38, %v1680_v39 }
 0x50b   :  { %v2346_v41 = vpop.f32.mrf.mxu0 }
 0x50c   :  { %v2347_v43 = vadd.f32 %v2346_v41, %v2345_v40  ;;  %v1826_v47 = vmax.f32 %v1812_v42, 0.0 }
 0x50d   :  { %v2348_v44 = vpop.f32.mrf.mxu0 }
 0x50e   :  { %v1815_v45 = vadd.f32 %v2347_v43, %v1680_v39 }
 0x50f   :  { %v2349_v46 = vpop.f32.mrf.mxu0 }
 0x510   :  { %v1827_v48 = vmax.f32 %v1815_v45, 0.0  ;;  %v2350_v49 = vadd.f32 %v2349_v46, %v2348_v44 }
 0x511   :  { %v2351_v16 = vpop.f32.mrf.mxu0 }
 0x512   :  { %v1846_v50 = vpack.c.bf16 %v1827_v48, %v1826_v47  ;;  %v1820_v52 = vadd.f32 %v2350_v49, %v1680_v39 }
 0x513   :  { %v2352_v51 = vpop.f32.mrf.mxu0 }
 0x514   :  { %v2353_v53 = vadd.f32 %v2352_v51, %v2351_v16  ;;  %2390 = vmatprep.mubr.bf16.mxu0 %v1846_v50  ;;  %v1828_v55 = vmax.f32 %v1820_v52, 0.0 }
 0x516   :  { %v1823_v54 = vadd.f32 %v2353_v53, %v1680_v39 }
 0x518   :  { %v1829_v56 = vmax.f32 %v1823_v54, 0.0 }
 0x51a   :  { %v1847_v57 = vpack.c.bf16 %v1829_v56, %v1828_v55 }
 0x51c   :  { %2391 = vmatmul.mubr.bf16.vlgmr.msra.gmra.mxu0 %v1847_v57 }
 0x5dc   :  { %v2392_v61 = vpop.f32.mrf.mxu0 }
 0x5dd   :  { %v1940_v4 = vadd.f32 %v2392_v61, %v1848_v63 }
 0x5de   :  { %v1931_v62 = vpop.f32.mrf.mxu0 }
 0x5df   :  { %v1932_v2 = vadd.f32 %v1931_v62, %v1848_v63  ;;  %v1948_v10 = vmax.f32 %v1940_v4, 0.0 }
 0x5e0   :  { %v2393_v1 = vpop.f32.mrf.mxu0 }
 0x5e1   :  { %v1943_v3 = vadd.f32 %v2393_v1, %v1848_v63  ;;  %v1946_v8 = vmax.f32 %v1932_v2, 0.0 }
 0x5e2   :  { %v1934_v5 = vpop.f32.mrf.mxu0 }
 0x5e3   :  { %v1935_v6 = vadd.f32 %v1934_v5, %v1848_v63  ;;  %v1949_v7 = vmax.f32 %v1943_v3, 0.0 }
 0x5e5   :  { %v1947_v9 = vmax.f32 %v1935_v6, 0.0  ;;  %v1967_v12 = vpack.c.bf16 %v1949_v7, %v1948_v10 }
 0x5e7   :  { %v1966_v11 = vpack.c.bf16 %v1947_v9, %v1946_v8 }
 0x5e9   :  { %2410 = vmatprep.mubr.bf16.mxu1 %v1966_v11 }
 0x5ea   :  { %2411 = vmatmul.mubr.bf16.vlgmr.msra.gmra.mxu1 %v1967_v12 }
 0x6aa   :  { %v2412_v17 = vpop.f32.mrf.mxu1 }
 0x6ab   :  { %v2060_v14 = vadd.f32 %v2412_v17, %v1968_v13 }
 0x6ac   :  { %v2051_v18 = vpop.f32.mrf.mxu1 }
 0x6ad   :  { %2068 = vst [vmem:[#allocation7 + $0x10] sm:$0xff] %v2060_v14  ;;  %v2052_v15 = vadd.f32 %v2051_v18, %v1968_v13 }
 0x6ae   :  { %v2413_v19 = vpop.f32.mrf.mxu1 }
 0x6af   :  { %2066 = vst [vmem:[#allocation7] sm:$0xff] %v2052_v15  ;;  %v2063_v20 = vadd.f32 %v2413_v19, %v1968_v13 }
 0x6b0   :  { %v2054_v21 = vpop.f32.mrf.mxu1 }
 0x6b1   :  { %2069 = vst [vmem:[#allocation7 + $0x18] sm:$0xff] %v2063_v20  ;;  %v2055_v22 = vadd.f32 %v2054_v21, %v1968_v13 }
 0x6b3   :  { %2067 = vst [vmem:[#allocation7 + $0x8] sm:$0xff] %v2055_v22 }
 0x6b4   :  { %2763 = shalt.err (!%p2760_p0)
}
 0x6b5   :  { %s2784_s28 = smov 128   ;;  %s2785_s29 = smov 8  }
 0x6b6   :  { %2081 = dma.vmem_to_hbm [thread:$0]  %s2076_s26, 512, %s2847_s3, [#allocation4], %s2784_s28, %s2784_s28, %s2785_s29  }
 0x6b7   :  { %2776 = dma.done.wait [#allocation4], 512  }
 0x6b8   :  { %2777 = vsyncadd [#allocation4], 4294966784 }
 0x6b9   :  { %2085 = vsyncpa [#allocation3], 1 }
 0x6ba   :  { %2086 = vsyncpa [#allocation6], 1 }
 0x6bb   :  { %2087 = vsyncpa [#allocation4], 1 }

</bundles_post_ra>
